<compile_context>
chip_gen: v7x
topology: tpu7x:2x2x1
jax: 0.10.0
libtpu: 0.0.40
codegen_flags: <defaults>
</compile_context>

<pallas_src>
import functools

import jax
import jax.numpy as jnp
from jax import lax
from jax.experimental import pallas as pl
from jax.experimental.pallas import tpu as pltpu

EPS = 1e-5  # nn.LayerNorm default


def _round_up(n, m):
    return pl.cdiv(n, m) * m


def prenorm_kernel(x_ref, gamma_ref, beta_ref, w_ref, bias_ref, o_ref, *, d_true):
    """One (TM, D_pad) row tile: LayerNorm over the real D features, then
    a bf16 x bf16 -> f32 matmul (fn := Linear)."""
    x = x_ref[...].astype(jnp.float32)            # (TM, D_pad)
    d_pad = x.shape[-1]

    if d_true == d_pad:
        # Feature axis already lane-dense: plain reductions.
        mean = jnp.mean(x, axis=-1, keepdims=True)
        centered = x - mean
        var = jnp.mean(centered * centered, axis=-1, keepdims=True)
    else:
        # Feature axis was zero-padded to a multiple of 128 in the wrapper;
        # reduce only over the first d_true real features (static mask).
        mask = lax.broadcasted_iota(jnp.int32, x.shape, 1) < d_true
        inv_d = jnp.float32(1.0 / d_true)
        xm = jnp.where(mask, x, 0.0)
        mean = jnp.sum(xm, axis=-1, keepdims=True) * inv_d
        centered = jnp.where(mask, x - mean, 0.0)
        var = jnp.sum(centered * centered, axis=-1, keepdims=True) * inv_d

    xn = centered * lax.rsqrt(var + EPS)
    # gamma/beta are zero-padded past d_true, so padded lanes stay 0.
    y = xn * gamma_ref[...].astype(jnp.float32) + beta_ref[...].astype(jnp.float32)

    # fn := Linear(dim, dim): bf16 operands on the MXU, f32 accumulation.
    out = jnp.dot(y.astype(jnp.bfloat16), w_ref[...],
                  preferred_element_type=jnp.float32)
    out = out + bias_ref[...].astype(jnp.float32)
    o_ref[...] = out.astype(o_ref.dtype)


def prenorm(x, gamma, beta, w, bias, *, block_rows=512):
    """x: (B, N, D) -> (B, N, Dout). LayerNorm(D) then Linear(D, Dout)."""
    assert block_rows % 8 == 0
    B, N, D = x.shape
    Din, Dout = w.shape
    assert Din == D

    R = B * N
    x2d = x.reshape(R, D)

    # Lane-dense padding of the feature dims to multiples of 128.
    D_pad = _round_up(D, 128)
    Dout_pad = _round_up(Dout, 128)

    # Row tiling: biggest tile that is useful but not larger than the data.
    tm = min(block_rows, _round_up(R, 8))
    R_pad = _round_up(R, tm)

    if R_pad != R or D_pad != D:
        x2d = jnp.pad(x2d, ((0, R_pad - R), (0, D_pad - D)))
    gamma2 = jnp.pad(jnp.reshape(gamma, (1, D)), ((0, 0), (0, D_pad - D)))
    beta2 = jnp.pad(jnp.reshape(beta, (1, D)), ((0, 0), (0, D_pad - D)))
    # Weight stays resident across all row tiles; feed it to the MXU as bf16.
    w_p = jnp.pad(w, ((0, D_pad - D), (0, Dout_pad - Dout))).astype(jnp.bfloat16)
    bias_p = jnp.pad(jnp.reshape(bias, (1, Dout)), ((0, 0), (0, Dout_pad - Dout)))

    kernel = functools.partial(prenorm_kernel, d_true=D)

    out2d = pl.pallas_call(
        kernel,
        out_shape=jax.ShapeDtypeStruct((R_pad, Dout_pad), x.dtype),
        grid_spec=pltpu.PrefetchScalarGridSpec(
            num_scalar_prefetch=0,
            grid=(R_pad // tm,),
            in_specs=[
                pl.BlockSpec((tm, D_pad), lambda i: (i, 0)),       # x rows
                pl.BlockSpec((1, D_pad), lambda i: (0, 0)),        # gamma (resident)
                pl.BlockSpec((1, D_pad), lambda i: (0, 0)),        # beta  (resident)
                pl.BlockSpec((D_pad, Dout_pad), lambda i: (0, 0)), # W     (resident)
                pl.BlockSpec((1, Dout_pad), lambda i: (0, 0)),     # bias  (resident)
            ],
            out_specs=pl.BlockSpec((tm, Dout_pad), lambda i: (i, 0)),
        ),
        compiler_params=pltpu.CompilerParams(
            # Rows are fully independent -> shard across TCs on v7x.
            dimension_semantics=("parallel",),
            # Explicit budget: fits v7x's 64 MiB physical VMEM with headroom.
            vmem_limit_bytes=48 * 1024 * 1024,
        ),
    )(x2d, gamma2, beta2, w_p, bias_p)

    return out2d[:R, :Dout].reshape(B, N, Dout)


if __name__ == "__main__":
    B, N, D = 2, 8, 32  # batch, seq, hidden(dim) -- small demo shapes

    key = jax.random.PRNGKey(0)
    kx, kw, kb = jax.random.split(key, 3)

    x = jax.random.normal(kx, (B, N, D), dtype=jnp.float32)

    # nn.LayerNorm(dim) params (default init: weight=1, bias=0).
    gamma = jnp.ones((D,), dtype=jnp.float32)
    beta = jnp.zeros((D,), dtype=jnp.float32)

    # fn = Linear(dim, dim): deterministic synthetic params.
    # TODO(synk): `fn` is arbitrary in PreNorm; a Linear is used as the fused example.
    w = jax.random.normal(kw, (D, D), dtype=jnp.float32) * 0.02
    bias = jax.random.normal(kb, (D,), dtype=jnp.float32) * 0.01

    out = prenorm(x, gamma, beta, w, bias)
    jax.block_until_ready(out)

    # Pure-JAX reference (fp32 LayerNorm, bf16-operand matmul like the kernel).
    mean = jnp.mean(x, axis=-1, keepdims=True)
    var = jnp.mean((x - mean) ** 2, axis=-1, keepdims=True)
    xn = (x - mean) / jnp.sqrt(var + EPS)
    y = xn * gamma + beta
    ref = jnp.dot(y.reshape(-1, D).astype(jnp.bfloat16), w.astype(jnp.bfloat16),
                  preferred_element_type=jnp.float32).reshape(B, N, D) + bias

    assert out.shape == (B, N, D)
    assert jnp.allclose(out, ref, atol=1e-2, rtol=1e-2), "mismatch vs reference"

    print("KERNEL_OK")
</pallas_src>

<mosaic_0001>
module attributes {stable_mosaic.version = 11 : i64} {
  func.func @prenorm_kernel(%arg0: i32, %arg1: memref<16x128xf32, #tpu.memory_space<vmem>>, %arg2: memref<1x128xf32, #tpu.memory_space<vmem>>, %arg3: memref<1x128xf32, #tpu.memory_space<vmem>>, %arg4: memref<128x128xbf16, #tpu.memory_space<vmem>>, %arg5: memref<1x128xf32, #tpu.memory_space<vmem>>, %arg6: memref<16x128xf32, #tpu.memory_space<vmem>>) attributes {dimension_semantics = [#tpu.dimension_semantics<parallel>], iteration_bounds = array<i64: 1>, scalar_prefetch = 0 : i64, scratch_operands = 0 : i64, tpu.core_type = #tpu.core_type<tc>, window_params = [{transform_indices = @transform_0, window_bounds = array<i64: 16, 128>}, {pipeline_mode = #tpu.pipeline_mode<synchronous>, transform_indices = @transform_1, window_bounds = array<i64: 1, 128>}, {pipeline_mode = #tpu.pipeline_mode<synchronous>, transform_indices = @transform_2, window_bounds = array<i64: 1, 128>}, {pipeline_mode = #tpu.pipeline_mode<synchronous>, transform_indices = @transform_3, window_bounds = array<i64: 128, 128>}, {pipeline_mode = #tpu.pipeline_mode<synchronous>, transform_indices = @transform_4, window_bounds = array<i64: 1, 128>}, {transform_indices = @transform_5, window_bounds = array<i64: 16, 128>}]} {
    %c0 = arith.constant 0 : index
    %c0_0 = arith.constant 0 : index
    %0 = vector.load %arg1[%c0, %c0_0] : memref<16x128xf32, #tpu.memory_space<vmem>>, vector<16x128xf32>
    %1 = tpu.iota {dimensions = array<i32: 1>} : vector<16x128xi32>
    %c32_i32 = arith.constant 32 : i32
    %2 = vector.broadcast %c32_i32 : i32 to vector<16x128xi32>
    %3 = arith.cmpi slt, %1, %2 : vector<16x128xi32>
    %cst = arith.constant 0.000000e+00 : f32
    %4 = vector.broadcast %cst : f32 to vector<16x128xf32>
    %5 = arith.select %3, %0, %4 : vector<16x128xi1>, vector<16x128xf32>
    %cst_1 = arith.constant dense<0.000000e+00> : vector<16xf32>
    %6 = vector.multi_reduction <add>, %5, %cst_1 [1] : vector<16x128xf32> to vector<16xf32>
    %7 = vector.shape_cast %6 : vector<16xf32> to vector<16x1xf32>
    %cst_2 = arith.constant 3.125000e-02 : f32
    %8 = vector.broadcast %cst_2 : f32 to vector<16x1xf32>
    %9 = arith.mulf %7, %8 : vector<16x1xf32>
    %10 = vector.broadcast %9 : vector<16x1xf32> to vector<16x128xf32>
    %11 = arith.subf %0, %10 : vector<16x128xf32>
    %cst_3 = arith.constant 0.000000e+00 : f32
    %12 = vector.broadcast %cst_3 : f32 to vector<16x128xf32>
    %13 = arith.select %3, %11, %12 : vector<16x128xi1>, vector<16x128xf32>
    %14 = arith.mulf %13, %13 : vector<16x128xf32>
    %cst_4 = arith.constant dense<0.000000e+00> : vector<16xf32>
    %15 = vector.multi_reduction <add>, %14, %cst_4 [1] : vector<16x128xf32> to vector<16xf32>
    %16 = vector.shape_cast %15 : vector<16xf32> to vector<16x1xf32>
    %cst_5 = arith.constant 3.125000e-02 : f32
    %17 = vector.broadcast %cst_5 : f32 to vector<16x1xf32>
    %18 = arith.mulf %16, %17 : vector<16x1xf32>
    %cst_6 = arith.constant 9.99999974E-6 : f32
    %19 = vector.broadcast %cst_6 : f32 to vector<16x1xf32>
    %20 = arith.addf %18, %19 : vector<16x1xf32>
    %21 = math.rsqrt %20 : vector<16x1xf32>
    %22 = vector.broadcast %21 : vector<16x1xf32> to vector<16x128xf32>
    %23 = arith.mulf %13, %22 : vector<16x128xf32>
    %c0_7 = arith.constant 0 : index
    %c0_8 = arith.constant 0 : index
    %24 = vector.load %arg2[%c0_7, %c0_8] : memref<1x128xf32, #tpu.memory_space<vmem>>, vector<1x128xf32>
    %25 = vector.broadcast %24 : vector<1x128xf32> to vector<16x128xf32>
    %26 = arith.mulf %23, %25 : vector<16x128xf32>
    %c0_9 = arith.constant 0 : index
    %c0_10 = arith.constant 0 : index
    %27 = vector.load %arg3[%c0_9, %c0_10] : memref<1x128xf32, #tpu.memory_space<vmem>>, vector<1x128xf32>
    %28 = vector.broadcast %27 : vector<1x128xf32> to vector<16x128xf32>
    %29 = arith.addf %26, %28 : vector<16x128xf32>
    %30 = arith.truncf %29 : vector<16x128xf32> to vector<16x128xbf16>
    %c0_11 = arith.constant 0 : index
    %c0_12 = arith.constant 0 : index
    %31 = vector.load %arg4[%c0_11, %c0_12] : memref<128x128xbf16, #tpu.memory_space<vmem>>, vector<128x128xbf16>
    %cst_13 = arith.constant dense<0.000000e+00> : vector<16x128xf32>
    %32 = tpu.matmul %30, %31, %cst_13 {dimension_numbers = #tpu.dot_dimension_numbers<[1], [0], [0], [1], [0, 0, 1, 1], [], []>} : vector<16x128xbf16>, vector<128x128xbf16>, vector<16x128xf32> -> vector<16x128xf32>
    %c0_14 = arith.constant 0 : index
    %c0_15 = arith.constant 0 : index
    %33 = vector.load %arg5[%c0_14, %c0_15] : memref<1x128xf32, #tpu.memory_space<vmem>>, vector<1x128xf32>
    %34 = vector.broadcast %33 : vector<1x128xf32> to vector<16x128xf32>
    %35 = arith.addf %32, %34 : vector<16x128xf32>
    %c0_16 = arith.constant 0 : index
    %c0_17 = arith.constant 0 : index
    %36 = vector.load %arg6[%c0_16, %c0_17] : memref<16x128xf32, #tpu.memory_space<vmem>>, vector<16x128xf32>
    tpu.vector_store %arg6[%c0_16, %c0_17], %35 {strides = array<i32>} : memref<16x128xf32, #tpu.memory_space<vmem>>, vector<16x128xf32>,
    return
  }
  func.func @transform_0(%arg0: i32) -> (i32, i32) {
    %c0_i32 = arith.constant 0 : i32
    %c0_i32_0 = arith.constant 0 : i32
    return %arg0, %c0_i32 : i32, i32
  }
  func.func @transform_1(%arg0: i32) -> (i32, i32) {
    %c0_i32 = arith.constant 0 : i32
    %c0_i32_0 = arith.constant 0 : i32
    %c0_i32_1 = arith.constant 0 : i32
    return %c0_i32, %c0_i32_0 : i32, i32
  }
  func.func @transform_2(%arg0: i32) -> (i32, i32) {
    %c0_i32 = arith.constant 0 : i32
    %c0_i32_0 = arith.constant 0 : i32
    %c0_i32_1 = arith.constant 0 : i32
    return %c0_i32, %c0_i32_0 : i32, i32
  }
  func.func @transform_3(%arg0: i32) -> (i32, i32) {
    %c0_i32 = arith.constant 0 : i32
    %c0_i32_0 = arith.constant 0 : i32
    %c0_i32_1 = arith.constant 0 : i32
    return %c0_i32, %c0_i32_0 : i32, i32
  }
  func.func @transform_4(%arg0: i32) -> (i32, i32) {
    %c0_i32 = arith.constant 0 : i32
    %c0_i32_0 = arith.constant 0 : i32
    %c0_i32_1 = arith.constant 0 : i32
    return %c0_i32, %c0_i32_0 : i32, i32
  }
  func.func @transform_5(%arg0: i32) -> (i32, i32) {
    %c0_i32 = arith.constant 0 : i32
    %c0_i32_0 = arith.constant 0 : i32
    return %arg0, %c0_i32 : i32, i32
  }
}

</mosaic_0001>

<bundles_post_ra>
// kernel: tpu_custom_call.1
= control target key start
LH: loop header
LB: loop body
LE: loop exit
PB: predicated region body
PF: predicated region fallthrough
CT: control target
= control target key end

     0   :  { %10 = vsyncpa [#allocation3], 0  ;;  %s459_s0 = inlined_call_operand.hbm [shape: f32[16,128], index: 0, kind: input, shape index: {}]   ;;  %s460_s1 = inlined_call_operand.vmem [shape: f32[1,128], index: 1, kind: input, shape index: {}]   ;;  %s461_s2 = inlined_call_operand.vmem [shape: f32[1,128], index: 2, kind: input, shape index: {}]   ;;  %s462_s3 = inlined_call_operand.hbm [shape: bf16[128,128], index: 3, kind: input, shape index: {}]   ;;  %s463_s4 = inlined_call_operand.vmem [shape: f32[1,128], index: 4, kind: input, shape index: {}]   ;;  %s464_s5 = inlined_call_operand.hbm [shape: f32[16,128], index: 5, kind: output, shape index: {}]  }
   0x1   :  { %11 = vsyncpa [#allocation6], 0 }
   0x2   :  { %12 = vsyncpa [#allocation4], 0  ;;  %s365_s18 = smov [#allocation2]   ;;  %s293_s22 = scalar_lea.hbm %s459_s0, 256 }
   0x3   :  { %s18_s19 = sshll.u32 %s365_s18, 4  ;;  %p294_p0 = scmp.ne.s32.totalorder %s459_s0, %s293_s22  ;;  %s19_s19 = int_to_ptr.vmem [resolvable:$true] %s18_s19 }
   0x4   :  { %p297_p1 = scmp.lt.u32.totalorder %s293_s22, %s459_s0 }
   0x6   :  { %p299_p2 = pnand %p297_p1, %p294_p0 }
   0x8   :  { %302 = shalt.err (!%p299_p2)
}
   0x9   :  { %s303_s27 = scalar_lea.vmem %s19_s19, 256  ;;  %p308_p4 = scmp.lt.s32.totalorder %s19_s19, %s19_s19 }
   0xa   :  { %p304_p3 = scmp.ne.s32.totalorder %s19_s19, %s303_s27  ;;  %p309_p5 = scmp.lt.s32.totalorder %s303_s27, %s303_s27 }
   0xc   :  { %p310_p6 = por %p309_p5, %p308_p4 }
   0xe   :  { %p311_p7 = pnand %p310_p6, %p304_p3 }
  0x10   :  { %314 = shalt.err (!%p311_p7)
}
  0x11   :  { %s366_s28 = smov 128   ;;  %s367_s29 = smov 8  }
  0x12   :  { %24 = dma.hbm_to_vmem [thread:$0]  %s459_s0, 256, %s19_s19, [#allocation3], %s366_s28, %s366_s28, %s367_s29  }
  0x13   :  { %s368_s7 = smov [#allocation5]   ;;  %s315_s11 = scalar_lea.hbm %s462_s3, 1024 }
  0x14   :  { %s34_s8 = sshll.u32 %s368_s7, 4  ;;  %p316_p8 = scmp.ne.s32.totalorder %s462_s3, %s315_s11  ;;  %s35_s8 = int_to_ptr.vmem [resolvable:$true] %s34_s8 }
  0x15   :  { %p319_p9 = scmp.lt.u32.totalorder %s315_s11, %s462_s3 }
  0x17   :  { %p321_p10 = pnand %p319_p9, %p316_p8 }
  0x19   :  { %324 = shalt.err (!%p321_p10)
}
  0x1a   :  { %s325_s16 = scalar_lea.vmem %s35_s8, 1024  ;;  %p330_p12 = scmp.lt.s32.totalorder %s35_s8, %s35_s8 }
  0x1b   :  { %p326_p11 = scmp.ne.s32.totalorder %s35_s8, %s325_s16  ;;  %p331_p13 = scmp.lt.s32.totalorder %s325_s16, %s325_s16 }
  0x1d   :  { %p332_p0 = por %p331_p13, %p330_p12 }
  0x1f   :  { %p333_p1 = pnand %p332_p0, %p326_p11 }
  0x21   :  { %336 = shalt.err (!%p333_p1)
}
  0x22   :  { %s369_s0 = smov 64   ;;  %s370_s17 = smov 4  }
  0x23   :  { %40 = dma.hbm_to_vmem [thread:$0]  %s462_s3, 1024, %s35_s8, [#allocation6], %s369_s0, %s369_s0, %s370_s17  }
  0x24   :  { %359 = dma.done.wait [#allocation3], 256  }
  0x25   :  { %360 = vsyncadd [#allocation3], 4294967040 }
  0x26   :  { %361 = dma.done.wait [#allocation6], 1024  }
  0x27   :  { %362 = vsyncadd [#allocation6], 4294966272  ;;  %v52_v0 = vlaneseq  ;;  %v50_v2 = vld [vmem:[#allocation2] sm:$0xff]  ;;  %v51_v3 = vld [vmem:[#allocation2 + $0x8] sm:$0xff]  ;;  %v371_v7 = vmov 0.0   ;;  %vm372_vm1 = vmmov 0  }
  0x28   :  { %v281_v6 = vld [vmem:[#allocation5] sm:$0xff]   ;;  %252 = vmatprep.subr.bf16.mxu0 %v371_v7  ;;  %v282_v18 = vld [vmem:[#allocation5 + $0x8] sm:$0xff]   ;;  %v283_v19 = vld [vmem:[#allocation5 + $0x10] sm:$0xff]   ;;  %268 = vmatprep.mubr.msk.bf16.mxu0 %vm372_vm1, %v371_v7  ;;  %s373_s25 = smov [#allocation7]  }
  0x29   :  { %v53_v1 = vand.u32 127, %v52_v0  ;;  %253 = vmatpush3.bf16.msra.mxu0 %v281_v6  ;;  %v284_v20 = vld [vmem:[#allocation5 + $0x18] sm:$0xff]   ;;  %v285_v21 = vld [vmem:[#allocation5 + $0x20] sm:$0xff]   ;;  %v286_v22 = vld [vmem:[#allocation5 + $0x28] sm:$0xff]   ;;  %s219_s26 = sshll.u32 %s373_s25, 4  ;;  %s220_s26 = int_to_ptr.vmem [resolvable:$true] %s219_s26 }
  0x2a   :  { %254 = vmatprep.subr.bf16.mxu0 %v371_v7  ;;  %v287_v23 = vld [vmem:[#allocation5 + $0x30] sm:$0xff]   ;;  %v288_v24 = vld [vmem:[#allocation5 + $0x38] sm:$0xff]   ;;  %p342_p3 = scmp.lt.s32.totalorder %s220_s26, %s220_s26 }
  0x2b   :  { %vm54_vm0 = vcmp.lt.s32.totalorder %v53_v1, 32  ;;  %v232_v33 = vld [vmem:[%s460_s1] ss:$0 sm:$0xff]  ;;  %s337_s1 = scalar_lea.vmem %s220_s26, 256 }
  0x2c   :  { %v55_v4 = vsel %vm54_vm0, %v50_v2, 0.0  ;;  %v56_v5 = vsel %vm54_vm0, %v51_v3, 0.0  ;;  %v233_v37 = vld [vmem:[%s461_s2] ss:$0 sm:$0xff]  ;;  %p338_p2 = scmp.ne.s32.totalorder %s220_s26, %s337_s1  ;;  %p343_p4 = scmp.lt.s32.totalorder %s337_s1, %s337_s1 }
  0x2d   :  { %57 = vadd.xlane.f32.xlu0 %v55_v4  ;;  %255 = vmatpush3.bf16.msra.mxu0 %v282_v18  ;;  %v234_v42 = vld [vmem:[%s463_s4] ss:$0 sm:$0xff] }
  0x2e   :  { %256 = vmatprep.subr.bf16.mxu0 %v371_v7  ;;  %p344_p5 = por %p343_p4, %p342_p3 }
  0x30   :  { %p345_p6 = pnand %p344_p5, %p338_p2 }
  0x31   :  { %59 = vadd.xlane.f32.xlu0 %v56_v5  ;;  %257 = vmatpush3.bf16.msra.mxu0 %v283_v19 }
  0x32   :  { %258 = vmatprep.subr.bf16.mxu0 %v371_v7 }
  0x35   :  { %259 = vmatpush3.bf16.msra.mxu0 %v284_v20 }
  0x36   :  { %260 = vmatprep.subr.bf16.mxu0 %v371_v7 }
  0x39   :  { %261 = vmatpush3.bf16.msra.mxu0 %v285_v21 }
  0x3a   :  { %262 = vmatprep.subr.bf16.mxu0 %v371_v7 }
  0x3d   :  { %263 = vmatpush3.bf16.msra.mxu0 %v286_v22 }
  0x3e   :  { %264 = vmatprep.subr.bf16.mxu0 %v371_v7 }
  0x41   :  { %265 = vmatpush3.bf16.msra.mxu0 %v287_v23 }
  0x42   :  { %266 = vmatprep.subr.bf16.mxu0 %v371_v7 }
  0x45   :  { %267 = vmatpush3.bf16.msra.mxu0 %v288_v24 }
  0xba   :  { %v58_v8 = vpop.xlane.xlu0 %57 }
  0xbb   :  { %v61_v9 = vmul.f32 0.03125, %v58_v8 }
  0xbd   :  { %v63_v10 = vsub.f32 %v50_v2, %v61_v9 }
  0xbe   :  { %v60_v11 = vpop.xlane.xlu0 %59 }
  0xbf   :  { %v62_v12 = vmul.f32 0.03125, %v60_v11  ;;  %v65_v13 = vsel %vm54_vm0, %v63_v10, 0.0 }
  0xc0   :  { %v67_v14 = vmul.f32 %v65_v13, %v65_v13 }
  0xc1   :  { %v64_v15 = vsub.f32 %v51_v3, %v62_v12 }
  0xc2   :  { %69 = vadd.xlane.f32.xlu1 %v67_v14 }
  0xc3   :  { %v66_v16 = vsel %vm54_vm0, %v64_v15, 0.0 }
  0xc4   :  { %v68_v17 = vmul.f32 %v66_v16, %v66_v16 }
  0xc6   :  { %71 = vadd.xlane.f32.xlu1 %v68_v17 }
 0x14f   :  { %v70_v25 = vpop.xlane.xlu1 %69 }
 0x150   :  { %v73_v26 = vmul.f32 0.03125, %v70_v25 }
 0x152   :  { %v75_v27 = vadd.f32 1e-05, %v73_v26 }
 0x153   :  { %v72_v28 = vpop.xlane.xlu1 %71 }
 0x154   :  { %289 = vrsqrt.f32 %v75_v27  ;;  %v74_v29 = vmul.f32 0.03125, %v72_v28 }
 0x156   :  { %v76_v30 = vadd.f32 1e-05, %v74_v29 }
 0x158   :  { %291 = vrsqrt.f32 %v76_v30 }
 0x15e   :  { %v290_v31 = vpop.eup %289 }
 0x15f   :  { %v79_v32 = vmul.f32 %v290_v31, %v65_v13 }
 0x161   :  { %v88_v36 = vmul.f32 %v232_v33, %v79_v32 }
 0x162   :  { %v292_v34 = vpop.eup %291 }
 0x163   :  { %v80_v35 = vmul.f32 %v292_v34, %v66_v16  ;;  %v97_v39 = vadd.f32 %v233_v37, %v88_v36 }
 0x165   :  { %v89_v38 = vmul.f32 %v232_v33, %v80_v35 }
 0x167   :  { %v98_v40 = vadd.f32 %v233_v37, %v89_v38 }
 0x169   :  { %v99_v41 = vpack.c.bf16 %v98_v40, %v97_v39 }
 0x16b   :  { %269 = vmatmul.mubr.bf16.vlgmr.msra.gmra.mrb[0].mxu0 %v99_v41 }
 0x23e   :  { %v205_v43 = vpop.f32.mrb[0].mxu0 }
 0x23f   :  { %v206_v44 = vadd.f32 %v234_v42, %v205_v43  ;;  %v270_v45 = vpop.f32.mrb[1].mxu0 }
 0x240   :  { %v208_v46 = vpop.f32.mrb[2].mxu0 }
 0x241   :  { %212 = vst [vmem:[#allocation7] sm:$0xff] %v206_v44  ;;  %v209_v47 = vadd.f32 %v234_v42, %v208_v46  ;;  %v271_v48 = vpop.f32.mrb[3].mxu0 }
 0x243   :  { %213 = vst [vmem:[#allocation7 + $0x8] sm:$0xff] %v209_v47 }
 0x244   :  { %348 = shalt.err (!%p345_p6)
}
 0x245   :  { %s349_s27 = scalar_lea.hbm %s464_s5, 256 }
 0x246   :  { %p350_p7 = scmp.ne.s32.totalorder %s464_s5, %s349_s27  ;;  %p353_p8 = scmp.lt.u32.totalorder %s349_s27, %s464_s5 }
 0x248   :  { %p355_p9 = pnand %p353_p8, %p350_p7 }
 0x24a   :  { %358 = shalt.err (!%p355_p9)
}
 0x24b   :  { %225 = dma.vmem_to_hbm [thread:$0]  %s220_s26, 256, %s464_s5, [#allocation4], %s366_s28, %s366_s28, %s367_s29  }
 0x24c   :  { %363 = dma.done.wait [#allocation4], 256  }
 0x24d   :  { %364 = vsyncadd [#allocation4], 4294967040 }
 0x24e   :  { %229 = vsyncpa [#allocation3], 1 }
 0x24f   :  { %230 = vsyncpa [#allocation6], 1 }
 0x250   :  { %231 = vsyncpa [#allocation4], 1 }

</bundles_post_ra>
